<compile_context>
chip_gen: v7x
topology: tpu7x:2x2x1
jax: 0.10.0
libtpu: 0.0.40
codegen_flags: <defaults>
</compile_context>

<pallas_src>
import functools

import jax
import jax.numpy as jnp
from jax import lax
from jax.experimental import pallas as pl
from jax.experimental.pallas import tpu as pltpu

LANE = 128  # TPU lane width


def _round_up(n, m):
    return (n + m - 1) // m * m


def _floor_pow2(n):
    return 1 << (int(n).bit_length() - 1)


def _pad_axis(a, axis, new_size):
    pad = new_size - a.shape[axis]
    if pad == 0:
        return a
    widths = [(0, 0)] * a.ndim
    widths[axis] = (0, pad)
    return jnp.pad(a, widths)


def _choose_tiles(HW, B, tq_target, tkv_target):
    """Pick (TQ, TKV, HW_pad) such that TQ and TKV both divide HW_pad,
    HW_pad - HW < TKV (the last kv tile always holds >=1 real token), and
    B * n_q >= 2 when possible (two v7x TensorCores)."""
    tq_t = max(8, _floor_pow2(tq_target))
    tkv_t = max(tq_t, _floor_pow2(tkv_target))      # both pow2, tq_t | tkv_t
    small = _round_up(HW, 8)
    if small <= tq_t:
        TQ = TKV = small
    elif small <= tkv_t:
        TQ = tq_t
        TKV = _round_up(small, TQ)
    else:
        TQ, TKV = tq_t, tkv_t
    HW_pad = _round_up(HW, TKV)
    while B * (HW_pad // TQ) < 2 and TQ >= 16 and TQ % 16 == 0:
        TQ //= 2
    return TQ, TKV, HW_pad


def _bf16_exp_default():
    """bf16 exp/VPU only pays off on v6e/v7x; keep f32 exp on v5e / unknown."""
    try:
        kind = jax.devices()[0].device_kind.lower()
    except Exception:
        return False
    return ("v6" in kind) or ("v7" in kind) or ("7x" in kind)


def _attn_vmem_limit(TQ, TKV, Cout_pad):
    io = 2 * (TQ * LANE * 2            # Q tile (bf16, double-buffered)
              + 2 * TKV * LANE * 2     # K + V tiles
              + LANE * Cout_pad * 2 + Cout_pad * 4   # W weight + bias
              + TQ * Cout_pad * 2)     # output tile
    scratch = TQ * LANE * 4 + 2 * TQ * LANE * 4      # acc + (m, l lane-padded)
    interm = TQ * TKV * (4 + 2)                      # s (f32) + p (bf16)
    need = io + scratch + interm
    # never request the full 64 MiB of a v7x core; 32-48 MiB is plenty here.
    return int(min(48 * 2**20, max(32 * 2**20, 2 * need)))


# --------------------------------------------------------------------------
# Prologue: 1x1 conv projections (BN+ReLU key/query shared, value), bf16 out.
# --------------------------------------------------------------------------
def _project_kernel(x_ref, wk_ref, bk_ref, wv_ref, bv_ref, qk_ref, v_ref):
    x = x_ref[...]                                                    # (TP, Cp) bf16
    qk = jnp.dot(x, wk_ref[...], preferred_element_type=jnp.float32) + bk_ref[...]
    qk_ref[...] = jnp.maximum(qk, 0.0).astype(qk_ref.dtype)           # (TP, 128) bf16
    v = jnp.dot(x, wv_ref[...], preferred_element_type=jnp.float32) + bv_ref[...]
    v_ref[...] = v.astype(v_ref.dtype)                                # (TP, 128) bf16


# --------------------------------------------------------------------------
# Flash-style attention over pre-projected bf16 K/Q (shared) and V, fused W.
# --------------------------------------------------------------------------
def _attn_kernel(q_ref, k_ref, v_ref, ww_ref, bw_ref, o_ref,
                 m_sc, l_sc, acc_sc, *, seq_len, kv_tile, need_mask, exp_bf16):
    ki = pl.program_id(2)
    nk = pl.num_programs(2)

    @pl.when(ki == 0)
    def _():
        m_sc[...] = jnp.full_like(m_sc, -jnp.inf)
        l_sc[...] = jnp.zeros_like(l_sc)
        acc_sc[...] = jnp.zeros_like(acc_sc)

    q = q_ref[...]                                                    # (TQ, 128) bf16
    k = k_ref[...]                                                    # (TKV, 128) bf16
    v = v_ref[...]                                                    # (TKV, 128) bf16

    # similarity tile: contract last dims of both operands (no transpose),
    # bf16 MXU operands, f32 accumulation; the softmax scale is pre-folded.
    s = lax.dot_general(q, k, dimension_numbers=(((1,), (1,)), ((), ())),
                        preferred_element_type=jnp.float32)           # (TQ, TKV)

    if need_mask:
        kv_idx = ki * kv_tile + lax.broadcasted_iota(jnp.int32, s.shape, 1)
        s = jnp.where(kv_idx < seq_len, s, -1e30)

    # online softmax update (unnormalized accumulation)
    m_prev = m_sc[...]
    m_new = jnp.maximum(m_prev, jnp.max(s, axis=-1, keepdims=True))   # (TQ, 1)
    alpha = jnp.exp(m_prev - m_new)
    s_shift = s - m_new
    if exp_bf16:
        p = jnp.exp(s_shift.astype(jnp.bfloat16))                     # bf16 EUP (v6e/v7x)
        l_sc[...] = alpha * l_sc[...] + jnp.sum(p, axis=-1, keepdims=True,
                                                dtype=jnp.float32)
        acc_sc[...] = alpha * acc_sc[...] + jnp.dot(
            p, v, preferred_element_type=jnp.float32)                 # (TQ, 128)
    else:
        p = jnp.exp(s_shift)                                          # f32 (v5e)
        l_sc[...] = alpha * l_sc[...] + jnp.sum(p, axis=-1, keepdims=True)
        acc_sc[...] = alpha * acc_sc[...] + jnp.dot(
            p.astype(jnp.bfloat16), v, preferred_element_type=jnp.float32)
    m_sc[...] = m_new

    # finalize: exact normalization + fused output 1x1 conv (W)
    @pl.when(ki == nk - 1)
    def _():
        ctx = acc_sc[...] / l_sc[...]                                 # exact divide
        out = jnp.dot(ctx.astype(jnp.bfloat16), ww_ref[...],
                      preferred_element_type=jnp.float32) + bw_ref[...]
        o_ref[...] = out.astype(o_ref.dtype)


def self_attention_block(x_nchw, params, *, key_channels,
                         tq_target=512, tkv_target=1024, exp_bf16=None):
    """params = (wk, bk, wv, bv, ww, bw), weights pre-transposed to (Cin, Cout),
    biases shaped (1, Cout); BN already folded into (wk, bk)."""
    wk, bk, wv, bv, ww, bw = params
    B, C, H, W = x_nchw.shape
    HW = H * W
    Ck, Cv, Cout = wk.shape[1], wv.shape[1], ww.shape[1]
    assert Ck <= LANE and Cv <= LANE, "key/value channels > 128 not supported here"
    if exp_bf16 is None:
        exp_bf16 = _bf16_exp_default()

    # Fold the key_channels**-0.5 softmax scale into the shared key/query
    # projection: ReLU commutes with a positive scale, and the scale appears
    # once on each side of qk @ qk^T.
    scale = float(key_channels) ** (-0.25)
    wk = wk * scale
    bk = bk * scale

    C_pad = _round_up(C, LANE)
    Cout_pad = _round_up(Cout, LANE)
    TQ, TKV, HW_pad = _choose_tiles(HW, B, tq_target, tkv_target)
    TP = TQ                                   # projection row tile (divides HW_pad)
    n_q, n_kv, n_p = HW_pad // TQ, HW_pad // TKV, HW_pad // TP
    need_mask = HW_pad != HW

    # Lane-dense bf16 weights / f32 biases; zero padding is exact.
    wk_p = _pad_axis(_pad_axis(wk, 0, C_pad), 1, LANE).astype(jnp.bfloat16)
    bk_p = _pad_axis(bk, 1, LANE).astype(jnp.float32)
    wv_p = _pad_axis(_pad_axis(wv, 0, C_pad), 1, LANE).astype(jnp.bfloat16)
    bv_p = _pad_axis(bv, 1, LANE).astype(jnp.float32)
    ww_p = _pad_axis(_pad_axis(ww, 0, LANE), 1, Cout_pad).astype(jnp.bfloat16)
    bw_p = _pad_axis(bw, 1, Cout_pad).astype(jnp.float32)

    x_tok = jnp.transpose(x_nchw, (0, 2, 3, 1)).reshape(B, HW, C)
    x_tok = _pad_axis(_pad_axis(x_tok, 2, C_pad), 1, HW_pad).astype(jnp.bfloat16)

    # ---- prologue: project tokens once into bf16 (HW_pad, 128) K/Q and V buffers.
    qk_buf, v_buf = pl.pallas_call(
        _project_kernel,
        out_shape=(jax.ShapeDtypeStruct((B, HW_pad, LANE), jnp.bfloat16),
                   jax.ShapeDtypeStruct((B, HW_pad, LANE), jnp.bfloat16)),
        grid_spec=pltpu.PrefetchScalarGridSpec(
            num_scalar_prefetch=0,
            grid=(B, n_p),
            in_specs=[
                pl.BlockSpec((None, TP, C_pad), lambda b, i: (b, i, 0)),
                pl.BlockSpec((C_pad, LANE), lambda b, i: (0, 0)),
                pl.BlockSpec((1, LANE), lambda b, i: (0, 0)),
                pl.BlockSpec((C_pad, LANE), lambda b, i: (0, 0)),
                pl.BlockSpec((1, LANE), lambda b, i: (0, 0)),
            ],
            out_specs=[
                pl.BlockSpec((None, TP, LANE), lambda b, i: (b, i, 0)),
                pl.BlockSpec((None, TP, LANE), lambda b, i: (b, i, 0)),
            ]),
        compiler_params=pltpu.CompilerParams(
            dimension_semantics=("parallel", "parallel")),
    )(x_tok, wk_p, bk_p, wv_p, bv_p)

    # ---- flash-style attention + fused output 1x1 conv.
    kernel = functools.partial(_attn_kernel, seq_len=HW, kv_tile=TKV,
                               need_mask=need_mask, exp_bf16=exp_bf16)

    flops = int(4 * B * HW_pad * HW_pad * LANE            # sim + p@v
                + 2 * B * HW_pad * LANE * Cout_pad)       # output projection
    transcendentals = int(B * HW_pad * HW_pad)
    bytes_accessed = int(2 * B * HW_pad * LANE * (1 + 2 * n_q)   # Q once, K/V per q tile
                         + 2 * B * HW_pad * Cout_pad             # bf16 writeback
                         + 2 * LANE * Cout_pad)

    out_tok = pl.pallas_call(
        kernel,
        out_shape=jax.ShapeDtypeStruct((B, HW_pad, Cout_pad), jnp.bfloat16),
        grid_spec=pltpu.PrefetchScalarGridSpec(
            num_scalar_prefetch=0,
            grid=(B, n_q, n_kv),
            in_specs=[
                # pre-projected features: query view / key view / value view
                pl.BlockSpec((None, TQ, LANE), lambda b, qi, ki: (b, qi, 0)),
                pl.BlockSpec((None, TKV, LANE), lambda b, qi, ki: (b, ki, 0)),
                pl.BlockSpec((None, TKV, LANE), lambda b, qi, ki: (b, ki, 0)),
                # W weight + bias (constant across grid; tiny)
                pl.BlockSpec((LANE, Cout_pad), lambda b, qi, ki: (0, 0)),
                pl.BlockSpec((1, Cout_pad), lambda b, qi, ki: (0, 0)),
            ],
            out_specs=pl.BlockSpec((None, TQ, Cout_pad),
                                   lambda b, qi, ki: (b, qi, 0)),
            scratch_shapes=[
                pltpu.VMEM((TQ, 1), jnp.float32),      # running max m
                pltpu.VMEM((TQ, 1), jnp.float32),      # running sum l
                pltpu.VMEM((TQ, LANE), jnp.float32),   # unnormalized context acc
            ]),
        compiler_params=pltpu.CompilerParams(
            dimension_semantics=("parallel", "parallel", "arbitrary"),
            vmem_limit_bytes=_attn_vmem_limit(TQ, TKV, Cout_pad)),
        cost_estimate=pl.CostEstimate(flops=flops,
                                      transcendentals=transcendentals,
                                      bytes_accessed=bytes_accessed),
    )(qk_buf, qk_buf, v_buf, ww_p, bw_p)

    out = out_tok[:, :HW, :Cout].astype(jnp.float32)
    return out.reshape(B, H, W, Cout).transpose(0, 3, 1, 2)


def _reference(x_nchw, params, key_channels):
    wk, bk, wv, bv, ww, bw = params
    B, C, H, W = x_nchw.shape
    xt = jnp.transpose(x_nchw, (0, 2, 3, 1)).reshape(B, H * W, C)
    qk = jnp.maximum(xt @ wk + bk, 0.0)
    v = xt @ wv + bv
    sim = jnp.einsum('bqc,bkc->bqk', qk, qk) * float(key_channels) ** (-0.5)
    p = jax.nn.softmax(sim, axis=-1)
    ctx = jnp.einsum('bqk,bkc->bqc', p, v)
    out = ctx @ ww + bw
    return out.reshape(B, H, W, -1).transpose(0, 3, 1, 2)


if __name__ == "__main__":
    B, C, H, W = 2, 16, 16, 16
    key_channels, value_channels = 8, 8
    out_channels = C            # out_channels=None -> in_channels
    eps = 1e-5

    ks = jax.random.split(jax.random.PRNGKey(0), 10)
    x = jax.random.normal(ks[0], (B, C, H, W), jnp.float32)

    # f_key: Conv2d(C, key_channels, 1) weight/bias
    wk_conv = 0.1 * jax.random.normal(ks[1], (key_channels, C), jnp.float32)
    bk_conv = 0.1 * jax.random.normal(ks[2], (key_channels,), jnp.float32)
    # BatchNorm2d(key_channels), inference form, folded into the conv
    gamma = 1.0 + 0.1 * jax.random.normal(ks[3], (key_channels,), jnp.float32)
    beta = 0.1 * jax.random.normal(ks[4], (key_channels,), jnp.float32)
    running_mean = 0.1 * jax.random.normal(ks[5], (key_channels,), jnp.float32)
    running_var = jax.random.uniform(ks[6], (key_channels,), jnp.float32, 0.5, 1.5)
    bn_scale = gamma / jnp.sqrt(running_var + eps)
    wk = (wk_conv * bn_scale[:, None]).T                          # (C, Ck)
    bk = ((bk_conv - running_mean) * bn_scale + beta)[None, :]    # (1, Ck)

    # f_value: Conv2d(C, value_channels, 1)
    wv = (0.1 * jax.random.normal(ks[7], (value_channels, C), jnp.float32)).T
    bv = (0.1 * jax.random.normal(ks[8], (value_channels,), jnp.float32))[None, :]

    # W: Conv2d(value_channels, out_channels, 1). Original __init__ zero-inits it
    # (output would be identically zero); use deterministic nonzero values so the
    # attention compute is observable.
    ww = (0.1 * jax.random.normal(ks[9], (out_channels, value_channels), jnp.float32)).T
    bw = jnp.zeros((1, out_channels), jnp.float32)

    params = (wk, bk, wv, bv, ww, bw)

    out = self_attention_block(x, params, key_channels=key_channels)
    out = jax.block_until_ready(out)

    ref = _reference(x, params, key_channels)
    assert out.shape == (B, out_channels, H, W), out.shape
    # bf16 operands for the HW^2 matmuls + bf16 token/weight streaming + bf16
    # output writeback -> tolerance reflects bf16, normalization itself is exact.
    assert jnp.allclose(out, ref, atol=2e-2, rtol=2e-2), "mismatch vs JAX reference"

    print("KERNEL_OK")
</pallas_src>

<mosaic_0001>
module attributes {stable_mosaic.version = 11 : i64} {
  func.func @_project_kernel(%arg0: i32, %arg1: i32, %arg2: memref<1x256x128xbf16, #tpu.memory_space<vmem>>, %arg3: memref<128x128xbf16, #tpu.memory_space<vmem>>, %arg4: memref<1x128xf32, #tpu.memory_space<vmem>>, %arg5: memref<128x128xbf16, #tpu.memory_space<vmem>>, %arg6: memref<1x128xf32, #tpu.memory_space<vmem>>, %arg7: memref<1x256x128xbf16, #tpu.memory_space<vmem>>, %arg8: memref<1x256x128xbf16, #tpu.memory_space<vmem>>) attributes {dimension_semantics = [#tpu.dimension_semantics<parallel>, #tpu.dimension_semantics<parallel>], iteration_bounds = array<i64: 2, 1>, scalar_prefetch = 0 : i64, scratch_operands = 0 : i64, tpu.core_type = #tpu.core_type<tc>, window_params = [{transform_indices = @transform_0, window_bounds = array<i64: 1, 256, 128>}, {pipeline_mode = #tpu.pipeline_mode<synchronous>, transform_indices = @transform_1, window_bounds = array<i64: 128, 128>}, {pipeline_mode = #tpu.pipeline_mode<synchronous>, transform_indices = @transform_2, window_bounds = array<i64: 1, 128>}, {pipeline_mode = #tpu.pipeline_mode<synchronous>, transform_indices = @transform_3, window_bounds = array<i64: 128, 128>}, {pipeline_mode = #tpu.pipeline_mode<synchronous>, transform_indices = @transform_4, window_bounds = array<i64: 1, 128>}, {transform_indices = @transform_5, window_bounds = array<i64: 1, 256, 128>}, {transform_indices = @transform_6, window_bounds = array<i64: 1, 256, 128>}]} {
    %c0 = arith.constant 0 : index
    %c0_0 = arith.constant 0 : index
    %c0_1 = arith.constant 0 : index
    %0 = vector.load %arg2[%c0, %c0_0, %c0_1] : memref<1x256x128xbf16, #tpu.memory_space<vmem>>, vector<1x256x128xbf16>
    %1 = vector.shape_cast %0 : vector<1x256x128xbf16> to vector<256x128xbf16>
    %c0_2 = arith.constant 0 : index
    %c0_3 = arith.constant 0 : index
    %2 = vector.load %arg3[%c0_2, %c0_3] : memref<128x128xbf16, #tpu.memory_space<vmem>>, vector<128x128xbf16>
    %cst = arith.constant dense<0.000000e+00> : vector<256x128xf32>
    %3 = tpu.matmul %1, %2, %cst {dimension_numbers = #tpu.dot_dimension_numbers<[1], [0], [0], [1], [0, 0, 1, 1], [], []>} : vector<256x128xbf16>, vector<128x128xbf16>, vector<256x128xf32> -> vector<256x128xf32>
    %c0_4 = arith.constant 0 : index
    %c0_5 = arith.constant 0 : index
    %4 = vector.load %arg4[%c0_4, %c0_5] : memref<1x128xf32, #tpu.memory_space<vmem>>, vector<1x128xf32>
    %5 = vector.broadcast %4 : vector<1x128xf32> to vector<256x128xf32>
    %6 = arith.addf %3, %5 : vector<256x128xf32>
    %cst_6 = arith.constant 0.000000e+00 : f32
    %7 = vector.broadcast %cst_6 : f32 to vector<256x128xf32>
    %8 = arith.maximumf %6, %7 : vector<256x128xf32>
    %9 = arith.truncf %8 : vector<256x128xf32> to vector<256x128xbf16>
    %c0_7 = arith.constant 0 : index
    %c0_8 = arith.constant 0 : index
    %c0_9 = arith.constant 0 : index
    %10 = vector.load %arg7[%c0_7, %c0_8, %c0_9] : memref<1x256x128xbf16, #tpu.memory_space<vmem>>, vector<1x256x128xbf16>
    %11 = vector.shape_cast %10 : vector<1x256x128xbf16> to vector<256x128xbf16>
    %12 = vector.shape_cast %9 : vector<256x128xbf16> to vector<1x256x128xbf16>
    tpu.vector_store %arg7[%c0_7, %c0_8, %c0_9], %12 {strides = array<i32>} : memref<1x256x128xbf16, #tpu.memory_space<vmem>>, vector<1x256x128xbf16>,
    %c0_10 = arith.constant 0 : index
    %c0_11 = arith.constant 0 : index
    %13 = vector.load %arg5[%c0_10, %c0_11] : memref<128x128xbf16, #tpu.memory_space<vmem>>, vector<128x128xbf16>
    %cst_12 = arith.constant dense<0.000000e+00> : vector<256x128xf32>
    %14 = tpu.matmul %1, %13, %cst_12 {dimension_numbers = #tpu.dot_dimension_numbers<[1], [0], [0], [1], [0, 0, 1, 1], [], []>} : vector<256x128xbf16>, vector<128x128xbf16>, vector<256x128xf32> -> vector<256x128xf32>
    %c0_13 = arith.constant 0 : index
    %c0_14 = arith.constant 0 : index
    %15 = vector.load %arg6[%c0_13, %c0_14] : memref<1x128xf32, #tpu.memory_space<vmem>>, vector<1x128xf32>
    %16 = vector.broadcast %15 : vector<1x128xf32> to vector<256x128xf32>
    %17 = arith.addf %14, %16 : vector<256x128xf32>
    %18 = arith.truncf %17 : vector<256x128xf32> to vector<256x128xbf16>
    %c0_15 = arith.constant 0 : index
    %c0_16 = arith.constant 0 : index
    %c0_17 = arith.constant 0 : index
    %19 = vector.load %arg8[%c0_15, %c0_16, %c0_17] : memref<1x256x128xbf16, #tpu.memory_space<vmem>>, vector<1x256x128xbf16>
    %20 = vector.shape_cast %19 : vector<1x256x128xbf16> to vector<256x128xbf16>
    %21 = vector.shape_cast %18 : vector<256x128xbf16> to vector<1x256x128xbf16>
    tpu.vector_store %arg8[%c0_15, %c0_16, %c0_17], %21 {strides = array<i32>} : memref<1x256x128xbf16, #tpu.memory_space<vmem>>, vector<1x256x128xbf16>,
    return
  }
  func.func @transform_0(%arg0: i32, %arg1: i32) -> (i32, i32, i32) {
    %c0_i32 = arith.constant 0 : i32
    %c0_i32_0 = arith.constant 0 : i32
    return %arg0, %arg1, %c0_i32 : i32, i32, i32
  }
  func.func @transform_1(%arg0: i32, %arg1: i32) -> (i32, i32) {
    %c0_i32 = arith.constant 0 : i32
    %c0_i32_0 = arith.constant 0 : i32
    %c0_i32_1 = arith.constant 0 : i32
    return %c0_i32, %c0_i32_0 : i32, i32
  }
  func.func @transform_2(%arg0: i32, %arg1: i32) -> (i32, i32) {
    %c0_i32 = arith.constant 0 : i32
    %c0_i32_0 = arith.constant 0 : i32
    %c0_i32_1 = arith.constant 0 : i32
    return %c0_i32, %c0_i32_0 : i32, i32
  }
  func.func @transform_3(%arg0: i32, %arg1: i32) -> (i32, i32) {
    %c0_i32 = arith.constant 0 : i32
    %c0_i32_0 = arith.constant 0 : i32
    %c0_i32_1 = arith.constant 0 : i32
    return %c0_i32, %c0_i32_0 : i32, i32
  }
  func.func @transform_4(%arg0: i32, %arg1: i32) -> (i32, i32) {
    %c0_i32 = arith.constant 0 : i32
    %c0_i32_0 = arith.constant 0 : i32
    %c0_i32_1 = arith.constant 0 : i32
    return %c0_i32, %c0_i32_0 : i32, i32
  }
  func.func @transform_5(%arg0: i32, %arg1: i32) -> (i32, i32, i32) {
    %c0_i32 = arith.constant 0 : i32
    %c0_i32_0 = arith.constant 0 : i32
    return %arg0, %arg1, %c0_i32 : i32, i32, i32
  }
  func.func @transform_6(%arg0: i32, %arg1: i32) -> (i32, i32, i32) {
    %c0_i32 = arith.constant 0 : i32
    %c0_i32_0 = arith.constant 0 : i32
    return %arg0, %arg1, %c0_i32 : i32, i32, i32
  }
}

</mosaic_0001>

<bundles_post_ra>
// kernel: tpu_custom_call.1
= control target key start
LH: loop header
LB: loop body
LE: loop exit
PB: predicated region body
PF: predicated region fallthrough
CT: control target
= control target key end

     0   :  { %12 = vsyncpa [#allocation3], 0  ;;  %s2790_s0 = inlined_call_operand.hbm [shape: bf16[2,256,128], index: 0, kind: input, shape index: {}]   ;;  %s2791_s1 = inlined_call_operand.hbm [shape: bf16[128,128], index: 1, kind: input, shape index: {}]   ;;  %s2792_s2 = inlined_call_operand.vmem [shape: f32[1,128], index: 2, kind: input, shape index: {}]   ;;  %s2793_s3 = inlined_call_operand.hbm [shape: bf16[128,128], index: 3, kind: input, shape index: {}]   ;;  %s2794_s4 = inlined_call_operand.vmem [shape: f32[1,128], index: 4, kind: input, shape index: {}]   ;;  %s2795_s5 = inlined_call_operand.hbm [shape: bf16[2,256,128], index: 5, kind: output, shape index: {0}]   ;;  %s2796_s6 = inlined_call_operand.hbm [shape: bf16[2,256,128], index: 6, kind: output, shape index: {1}]  }
   0x1   :  { %14 = vsyncpa [#allocation3 + $0x1], 0 }
   0x2   :  { %15 = vsyncpa [#allocation6], 0 }
   0x3   :  { %16 = vsyncpa [#allocation4], 0 }
   0x4   :  { %18 = vsyncpa [#allocation4 + $0x1], 0 }
   0x5   :  { %19 = vsyncpa [#allocation10], 0 }
   0x6   :  { %21 = vsyncpa [#allocation10 + $0x1], 0  ;;  %s2354_s21 = smov 0   ;;  %s2356_s22 = smov 0  }
   0x7   :  { %s2358_s23 = smov 0   ;;  %s2360_s24 = smov 0  }
   0x8   :  { %s2362_s25 = smov 0   ;;  %s2364_s26 = smov 0  }
   0x9 LB: > { %s1458_s27 = sadd.s32 4294967295, %s2308_s26   ;;  %s1459_s28 = sadd.s32 4294967294, %s2308_s26   ;;  %s2308_s26 = sphi %s2364_s26, %s27_s26   ;;  %s2304_s25 = sphi %s2362_s25, %s2823_s25   ;;  %s2300_s24 = sphi %s2360_s24, %s2822_s24   ;;  %s2296_s23 = sphi %s2358_s23, %s2821_s23   ;;  %s2292_s22 = sphi %s2356_s22, %s2820_s22   ;;  %s2288_s21 = sphi %s2354_s21, %s2819_s21  }
   0xa   : > { %p61_p0 = scmp.ne.s32.totalorder %s2292_s22, %s2288_s21  ;;  %p2388_p1 = scmp.eq.s32.totalorder %s1458_s27, 0 }
   0xb   : > { %p2392_p2 = scmp.eq.s32.totalorder %s1458_s27, 1  ;;  %p177_p3 = scmp.eq.s32.totalorder %s1459_s28, 1 }
   0xc   : > { %s2803_s29 = scalar_select %p2388_p1, 1, 0 }
   0xd   : > { %p2398_p4 = por %p2388_p1, %p61_p0  ;;  %p1460_p5 = scmp.ge.s32.totalorder %s2308_s26, 1 }
   0xe   : > { %p2403_p6 = por %p177_p3, %p61_p0  ;;  %p212_p7 = scmp.lt.s32.totalorder %s2308_s26, 3 }
   0xf   : > { %s2805_s7 = scalar_select %p2398_p4, 1, 0 }
  0x10   : > { %s2806_s8 = scalar_select %p2403_p6, 1, 0 }
  0x11   : > { %p2408_p8 = pnand %p1460_p5, %p212_p7  ;;  %s2310_s10 = smov [#allocation5]  }
  0x12   : > { %2807 = sst [smem:[#allocation15_spill]] %s2806_s8  ;;  %s224_s11 = sshll.u32 %s2310_s10, 4  ;;  %s2412_s11 = int_to_ptr.vmem [resolvable:$true] %s224_s11 }
  0x13   : > { %p1994_p9 = pneg %p2408_p8  ;;  %s2311_s13 = smov [#allocation7]  }
  0x14   : > { %s240_s14 = sshll.u32 %s2311_s13, 4  ;;  %s2104_s17 = scalar_lea.hbm %s2791_s1, 1024  ;;  %s2423_s14 = int_to_ptr.vmem [resolvable:$true] %s240_s14 }
  0x15   : > { %p2419_p11 = pnand %p1994_p9, %p2388_p1  ;;  %p2105_p12 = scmp.ne.s32.totalorder %s2791_s1, %s2104_s17 }
  0x16   : > { %p2111_p5 = scmp.lt.u32.totalorder %s2104_s17, %s2791_s1 }
  0x17   : > { %p2106_p13 = pneg %p2419_p11 }
  0x19   : > { %p2107_p0 = pnand %p2106_p13, %p2105_p12 }
  0x1b   : > { %p2108_p3 = pneg %p2107_p0 }
  0x1d   : > { %p2113_p7 = pnand %p2111_p5, %p2108_p3 }
  0x1f   : > { %2116 = shalt.err (!%p2113_p7)
}
  0x20   : > { %s2117_s28 = scalar_lea.vmem %s2412_s11, 1024  ;;  %p2125_p1 = scmp.lt.s32.totalorder %s2412_s11, %s2412_s11 }
  0x21   : > { %p2118_p9 = scmp.ne.s32.totalorder %s2412_s11, %s2117_s28  ;;  %p2126_p12 = scmp.lt.s32.totalorder %s2117_s28, %s2117_s28 }
  0x23   : > { %p2120_p10 = pnand %p2118_p9, %p2106_p13  ;;  %p2127_p0 = por %p2126_p12, %p2125_p1 }
  0x25   : > { %p2121_p6 = pneg %p2120_p10 }
  0x27   : > { %p2128_p4 = pnand %p2127_p0, %p2121_p6 }
  0x29   : > { %2131 = shalt.err (!%p2128_p4)
}
  0x2a   : > { %s2801_s10 = smov 64   ;;  %s2313_s13 = smov 4  }
  0x2b   : > { %1997 = dma.hbm_to_vmem [thread:$0]  (!%p2419_p11), %s2791_s1, 1024, %s2412_s11, [#allocation6], %s2801_s10, %s2801_s10, %s2313_s13  }
  0x2c   : > { %s2132_s19 = scalar_lea.hbm %s2793_s3, 1024 }
  0x2d   : > { %p2133_p1 = scmp.ne.s32.totalorder %s2793_s3, %s2132_s19  ;;  %p2139_p10 = scmp.lt.u32.totalorder %s2132_s19, %s2793_s3 }
  0x2f   : > { %p2135_p4 = pnand %p2133_p1, %p2106_p13 }
  0x31   : > { %p2136_p6 = pneg %p2135_p4 }
  0x33   : > { %p2141_p3 = pnand %p2139_p10, %p2136_p6 }
  0x35   : > { %2144 = shalt.err (!%p2141_p3)
}
  0x36   : > { %s2145_s11 = scalar_lea.vmem %s2423_s14, 1024  ;;  %p2153_p12 = scmp.lt.s32.totalorder %s2423_s14, %s2423_s14 }
  0x37   : > { %p2146_p5 = scmp.ne.s32.totalorder %s2423_s14, %s2145_s11  ;;  %p2154_p0 = scmp.lt.s32.totalorder %s2145_s11, %s2145_s11 }
  0x39   : > { %p2148_p7 = pnand %p2146_p5, %p2106_p13  ;;  %p2155_p1 = por %p2154_p0, %p2153_p12 }
  0x3b   : > { %p2149_p9 = pneg %p2148_p7 }
  0x3d   : > { %p2156_p4 = pnand %p2155_p1, %p2149_p9 }
  0x3f   : > { %2159 = shalt.err (!%p2156_p4)
}
  0x40   : > { %2000 = dma.hbm_to_vmem [thread:$0]  (!%p2419_p11), %s2793_s3, 1024, %s2423_s14, [#allocation6], %s2801_s10, %s2801_s10, %s2313_s13  }
  0x41   : > { %s39_s12 = sadd.s32 1, %s2304_s25  ;;  %s48_s16 = sadd.s32 1, %s2296_s23 }
  0x42   : > { %p41_p13 = scmp.ge.s32.totalorder %s39_s12, 2  ;;  %p55_p6 = scmp.ne.s32.totalorder %s2296_s23, %s2292_s22 }
  0x43   : > { %p56_p10 = scmp.eq.s32.totalorder %s2308_s26, 0  ;;  %p2014_p3 = scmp.lt.s32.totalorder %s2308_s26, 2 }
  0x44   : > { %s2825_s12 = smov (%p41_p13, %s39_s12), 0  ;;  %p2493_p7 = por %p2392_p2, %p55_p6 }
  0x45   : > { %p57_p5 = por %p56_p10, %p55_p6  ;;  %s43_s18 = ssub.s32 %s2304_s25, %s2825_s12 }
  0x46   : > { %s2810_s17 = scalar_select %p2493_p7, 1, 0 }
  0x47   : > { %s257_s19 = sand.u32 1, %s2296_s23   ;;  %p46_p9 = scmp.eq.s32.totalorder %s43_s18, 0 }
  0x48   : > { %s1464_s14 = sshll.u32 %s257_s19, 7  ;;  %s1579_s20 = sshll.u32 %s2304_s25, 11 }
  0x49   : > { %s2502_s27 = scalar_select %p46_p9, %s2296_s23, %s48_s16  }
  0x4a   : > { %s2507_s8 = scalar_lea.hbm %s2790_s0, %s1579_s20  ;;  %s261_s30 = scalar_lea.vmem [#allocation2], %s1464_s14 }
  0x4b   : > { %s270_s15 = sshll.u32 %s261_s30, 4  ;;  %p2511_p2 = pnand %p2014_p3, %p57_p5  ;;  %s2515_s15 = int_to_ptr.vmem [resolvable:$true] %s270_s15 }
  0x4c   : > { %s2517_s16 = scalar_lea.sflag [#allocation3], %s257_s19  ;;  %s2160_s18 = scalar_lea.hbm %s2507_s8, 2048 }
  0x4d   : > { %p2161_p11 = scmp.ne.s32.totalorder %s2507_s8, %s2160_s18  ;;  %p2162_p12 = pneg %p2511_p2 }
  0x4e   : > { %s2165_s28 = scalar_lea.hbm %s2790_s0, 4096  ;;  %p2166_p4 = scmp.lt.u32.totalorder %s2507_s8, %s2790_s0 }
  0x4f   : > { %p2163_p0 = pnand %p2162_p12, %p2161_p11  ;;  %p2167_p13 = scmp.lt.u32.totalorder %s2165_s28, %s2160_s18 }
  0x50   : > { %p2169_p10 = scmp.lt.u32.totalorder %s2160_s18, %s2507_s8 }
  0x51   : > { %p2164_p1 = pneg %p2163_p0  ;;  %p2168_p6 = por %p2167_p13, %p2166_p4 }
  0x53   : > { %p2170_p3 = por %p2169_p10, %p2168_p6 }
  0x55   : > { %p2171_p5 = pnand %p2170_p3, %p2164_p1 }
  0x57   : > { %2174 = shalt.err (!%p2171_p5)
}
  0x58   : > { %s2175_s19 = scalar_lea.vmem %s2515_s15, 2048  ;;  %s2314_s14 = smov [#allocation2]  }
  0x59   : > { %p2176_p9 = scmp.ne.s32.totalorder %s2515_s15, %s2175_s19  ;;  %s2180_s20 = sshll.u32 %s2314_s14, 4  ;;  %s2181_s20 = int_to_ptr.vmem [resolvable:$false] %s2180_s20 }
  0x5a   : > { %s2182_s11 = scalar_lea.vmem %s2181_s20, 4096  ;;  %p2183_p7 = scmp.lt.s32.totalorder %s2515_s15, %s2181_s20 }
  0x5b   : > { %p2178_p11 = pnand %p2176_p9, %p2162_p12  ;;  %p2184_p4 = scmp.lt.s32.totalorder %s2182_s11, %s2175_s19 }
  0x5d   : > { %p2179_p0 = pneg %p2178_p11  ;;  %p2185_p13 = por %p2184_p4, %p2183_p7 }
  0x5f   : > { %p2186_p6 = pnand %p2185_p13, %p2179_p0 }
  0x61   : > { %2189 = shalt.err (!%p2186_p6)
}
  0x62   : > { %s2812_s18 = smov 64   ;;  %282 = sbr.rel (%p2408_p8) target bundleno = 457 (0x1c9), region = 40 }
  0x63   : > { %2004 = dma.hbm_to_vmem [thread:$0]  (!%p2511_p2), %s2507_s8, 2048, %s2515_s15, %s2517_s16, %s2812_s18, %s2812_s18, %s2313_s13  }
  0x64   : > { %s2551_s28 = sand.u32 (!%p2408_p8), 1, %s2292_s22   ;;  %p2813_p7 = scmp.ne.s32.totalorder (!%p2408_p8), %s2805_s7, 0 }
  0x65   : > { %s2554_s30 = sshll.u32 (!%p2408_p8), %s2551_s28, 7  ;;  %s285_s10 = scalar_lea.sflag (!%p2408_p8), [#allocation3], %s2551_s28 }
  0x66   : > { %s2558_s19 = scalar_lea.vmem (!%p2408_p8), [#allocation2], %s2554_s30 }
  0x69   : > { %2271 = dma.done.wait (%p2813_p7), %s285_s10, 2048  }
  0x6a   : > { %2273 = vsyncadd (%p2813_p7), %s285_s10, 4294965248  ;;  %p2814_p2 = scmp.ne.s32.totalorder %s2803_s29, 0 }
  0x6c   : > { %2275 = dma.done.wait (%p2814_p2), [#allocation6], 2048  }
  0x6d   : > { %2277 = vsyncadd (%p2814_p2), [#allocation6], 4294965248  ;;  %v2072_v0 = vld [vmem:[#allocation5] sm:$0xff]   ;;  %v2074_v2 = vld [vmem:[#allocation5 + $0x8] sm:$0xff]   ;;  %s2603_s8 = scalar_lea.vmem [#allocation9], %s2554_s30  ;;  %s2607_s15 = scalar_lea.vmem [#allocation8], %s2554_s30 }
  0x6e   : > { %v2073_v1 = vld [vmem:[#allocation7] sm:$0xff]   ;;  %1884 = vmatprep.subr.bf16.mxu0 %v2072_v0  ;;  %v2075_v3 = vld [vmem:[#allocation7 + $0x8] sm:$0xff]   ;;  %v2076_v4 = vld [vmem:[#allocation5 + $0x10] sm:$0xff]   ;;  %s1644_s16 = sshll.u32 %s2300_s24, 11  ;;  %s1317_s14 = sshll.u32 %s2603_s8, 4  ;;  %s2700_s14 = int_to_ptr.vmem [resolvable:$true] %s1317_s14 }
  0x6f   : > { %1932 = vmatprep.subr.bf16.mxu1 %v2073_v1  ;;  %1885 = vmatpush3.bf16.msra.mxu0 %v2072_v0  ;;  %v2077_v5 = vld [vmem:[#allocation7 + $0x10] sm:$0xff]   ;;  %v2078_v6 = vld [vmem:[#allocation5 + $0x18] sm:$0xff]   ;;  %v2080_v8 = vld [vmem:[#allocation5 + $0x20] sm:$0xff]   ;;  %s1299_s20 = sshll.u32 %s2607_s15, 4  ;;  %s2698_s24 = scalar_lea.hbm %s2796_s6, %s1644_s16  ;;  %s2708_s20 = int_to_ptr.vmem [resolvable:$true] %s1299_s20 }
  0x70   : > { %1933 = vmatpush3.bf16.msra.mxu1 %v2073_v1  ;;  %1886 = vmatprep.subr.bf16.mxu0 %v2074_v2  ;;  %v2079_v7 = vld [vmem:[#allocation7 + $0x18] sm:$0xff]   ;;  %v2081_v9 = vld [vmem:[#allocation7 + $0x20] sm:$0xff]   ;;  %v2082_v10 = vld [vmem:[#allocation5 + $0x28] sm:$0xff]   ;;  %s1284_s29 = scalar_lea.sflag [#allocation10], %s2551_s28  ;;  %s2190_s7 = scalar_lea.vmem %s2700_s14, 2048 }
  0x71   : > { %1934 = vmatprep.subr.bf16.mxu1 %v2075_v3  ;;  %v2088_v11 = vld [vmem:[%s2558_s19] sm:$0xff]   ;;  %v2083_v12 = vld [vmem:[#allocation7 + $0x28] sm:$0xff]   ;;  %v2084_v13 = vld [vmem:[#allocation5 + $0x30] sm:$0xff]   ;;  %p2191_p8 = scmp.ne.s32.totalorder %s2700_s14, %s2190_s7  ;;  %p2815_p12 = scmp.ne.s32.totalorder %s2810_s17, 0 }
  0x72   : > { %1900 = vmatprep.mubr.bf16.mxu0 %v2088_v11  ;;  %1948 = vmatprep.mubr.bf16.mxu1 %v2088_v11  ;;  %v2085_v14 = vld [vmem:[#allocation7 + $0x30] sm:$0xff]   ;;  %v2086_v15 = vld [vmem:[#allocation5 + $0x38] sm:$0xff]   ;;  %v2089_v17 = vld [vmem:[%s2558_s19 + $0x8] sm:$0xff]   ;;  %s2315_s9 = smov [#allocation9]  }
  0x73   : > { %1887 = vmatpush3.bf16.msra.mxu0 %v2074_v2  ;;  %v2087_v16 = vld [vmem:[#allocation7 + $0x38] sm:$0xff]   ;;  %v2090_v18 = vld [vmem:[%s2558_s19 + $0x10] sm:$0xff]   ;;  %v2092_v20 = vld [vmem:[%s2558_s19 + $0x20] sm:$0xff]   ;;  %p2192_p1 = pnand %p2191_p8, %p2815_p12  ;;  %s2194_s13 = sshll.u32 %s2315_s9, 4  ;;  %s2195_s13 = int_to_ptr.vmem [resolvable:$false] %s2194_s13 }
  0x74   : > { %1935 = vmatpush3.bf16.msra.mxu1 %v2075_v3  ;;  %1888 = vmatprep.subr.bf16.mxu0 %v2076_v4  ;;  %v2091_v19 = vld [vmem:[%s2558_s19 + $0x18] sm:$0xff]   ;;  %v2093_v21 = vld [vmem:[%s2558_s19 + $0x28] sm:$0xff]   ;;  %v2094_v22 = vld [vmem:[%s2558_s19 + $0x30] sm:$0xff]   ;;  %s2196_s11 = scalar_lea.vmem %s2195_s13, 4096  ;;  %p2197_p3 = scmp.lt.s32.totalorder %s2700_s14, %s2195_s13 }
  0x75   : > { %1936 = vmatprep.subr.bf16.mxu1 %v2077_v5  ;;  %v2095_v23 = vld [vmem:[%s2558_s19 + $0x38] sm:$0xff]   ;;  %v2096_v24 = vld [vmem:[%s2558_s19 + $0x40] sm:$0xff]   ;;  %v2097_v25 = vld [vmem:[%s2558_s19 + $0x48] sm:$0xff]   ;;  %p2193_p10 = pneg %p2192_p1  ;;  %p2198_p5 = scmp.lt.s32.totalorder %s2196_s11, %s2190_s7 }
  0x76   : > { %v2098_v26 = vld [vmem:[%s2558_s19 + $0x50] sm:$0xff]   ;;  %v2099_v27 = vld [vmem:[%s2558_s19 + $0x58] sm:$0xff]   ;;  %v2100_v28 = vld [vmem:[%s2558_s19 + $0x60] sm:$0xff]  }
  0x77   : > { %1889 = vmatpush3.bf16.msra.mxu0 %v2076_v4  ;;  %v2101_v29 = vld [vmem:[%s2558_s19 + $0x68] sm:$0xff]   ;;  %v2102_v30 = vld [vmem:[%s2558_s19 + $0x70] sm:$0xff]   ;;  %v2103_v31 = vld [vmem:[%s2558_s19 + $0x78] sm:$0xff]   ;;  %s2706_s19 = scalar_lea.hbm %s2795_s5, %s1644_s16  ;;  %p2199_p9 = por %p2198_p5, %p2197_p3 }
  0x78   : > { %1937 = vmatpush3.bf16.msra.mxu1 %v2077_v5  ;;  %1890 = vmatprep.subr.bf16.mxu0 %v2078_v6  ;;  %v2587_v32 = vld [vmem:[%s2792_s2] ss:$0 sm:$0xff] }
  0x79   : > { %1938 = vmatprep.subr.bf16.mxu1 %v2079_v7  ;;  %v2592_v33 = vld [vmem:[%s2794_s4] ss:$0 sm:$0xff]  ;;  %p2200_p11 = pnand %p2199_p9, %p2193_p10 }
  0x7b   : > { %1891 = vmatpush3.bf16.msra.mxu0 %v2078_v6 }
  0x7c   : > { %1939 = vmatpush3.bf16.msra.mxu1 %v2079_v7  ;;  %1892 = vmatprep.subr.bf16.mxu0 %v2080_v8 }
  0x7d   : > { %1940 = vmatprep.subr.bf16.mxu1 %v2081_v9 }
  0x7f   : > { %1893 = vmatpush3.bf16.msra.mxu0 %v2080_v8 }
  0x80   : > { %1941 = vmatpush3.bf16.msra.mxu1 %v2081_v9  ;;  %1894 = vmatprep.subr.bf16.mxu0 %v2082_v10 }
  0x81   : > { %1942 = vmatprep.subr.bf16.mxu1 %v2083_v12 }
  0x83   : > { %1895 = vmatpush3.bf16.msra.mxu0 %v2082_v10 }
  0x84   : > { %1943 = vmatpush3.bf16.msra.mxu1 %v2083_v12  ;;  %1896 = vmatprep.subr.bf16.mxu0 %v2084_v13 }
  0x85   : > { %1944 = vmatprep.subr.bf16.mxu1 %v2085_v14 }
  0x87   : > { %1897 = vmatpush3.bf16.msra.mxu0 %v2084_v13 }
  0x88   : > { %1945 = vmatpush3.bf16.msra.mxu1 %v2085_v14  ;;  %1898 = vmatprep.subr.bf16.mxu0 %v2086_v15 }
  0x89   : > { %1946 = vmatprep.subr.bf16.mxu1 %v2087_v16 }
  0x8b   : > { %1899 = vmatpush3.bf16.msra.mxu0 %v2086_v15 }
  0x8c   : > { %1947 = vmatpush3.bf16.msra.mxu1 %v2087_v16 }
  0x8e   : > { %1901 = vmatmul.mubr.bf16.vlgmr.msra.gmra.mrb[0].mxu0 %v2089_v17 }
  0x8f   : > { %1949 = vmatmul.mubr.bf16.vlgmr.msra.gmra.mrb[0].mxu1 %v2089_v17  ;;  %1904 = vmatprep.mubr.bf16.mxu0 %v2090_v18 }
  0x90   : > { %1952 = vmatprep.mubr.bf16.mxu1 %v2090_v18 }
  0x96   : > { %1905 = vmatmul.mubr.bf16.gmra.mrb[4].mxu0 %v2091_v19 }
  0x97   : > { %1953 = vmatmul.mubr.bf16.gmra.mrb[4].mxu1 %v2091_v19  ;;  %1908 = vmatprep.mubr.bf16.mxu0 %v2092_v20 }
  0x98   : > { %1956 = vmatprep.mubr.bf16.mxu1 %v2092_v20 }
  0x9e   : > { %1909 = vmatmul.mubr.bf16.gmra.mrb[8].mxu0 %v2093_v21 }
  0x9f   : > { %1957 = vmatmul.mubr.bf16.gmra.mrb[8].mxu1 %v2093_v21  ;;  %1912 = vmatprep.mubr.bf16.mxu0 %v2094_v22 }
  0xa0   : > { %1960 = vmatprep.mubr.bf16.mxu1 %v2094_v22 }
  0xa6   : > { %1913 = vmatmul.mubr.bf16.gmra.mrb[12].mxu0 %v2095_v23 }
  0xa7   : > { %1961 = vmatmul.mubr.bf16.gmra.mrb[12].mxu1 %v2095_v23  ;;  %1916 = vmatprep.mubr.bf16.mxu0 %v2096_v24 }
  0xa8   : > { %1964 = vmatprep.mubr.bf16.mxu1 %v2096_v24 }
  0xae   : > { %1917 = vmatmul.mubr.bf16.gmra.mrb[16].mxu0 %v2097_v25 }
  0xaf   : > { %1965 = vmatmul.mubr.bf16.gmra.mrb[16].mxu1 %v2097_v25  ;;  %1920 = vmatprep.mubr.bf16.mxu0 %v2098_v26 }
  0xb0   : > { %1968 = vmatprep.mubr.bf16.mxu1 %v2098_v26 }
  0xb6   : > { %1921 = vmatmul.mubr.bf16.gmra.mrb[20].mxu0 %v2099_v27 }
  0xb7   : > { %1969 = vmatmul.mubr.bf16.gmra.mrb[20].mxu1 %v2099_v27  ;;  %1924 = vmatprep.mubr.bf16.mxu0 %v2100_v28 }
  0xb8   : > { %1972 = vmatprep.mubr.bf16.mxu1 %v2100_v28 }
  0xbe   : > { %1925 = vmatmul.mubr.bf16.gmra.mrb[24].mxu0 %v2101_v29 }
  0xbf   : > { %1973 = vmatmul.mubr.bf16.gmra.mrb[24].mxu1 %v2101_v29  ;;  %1928 = vmatprep.mubr.bf16.mxu0 %v2102_v30 }
  0xc0   : > { %1976 = vmatprep.mubr.bf16.mxu1 %v2102_v30 }
  0xc6   : > { %1929 = vmatmul.mubr.bf16.gmra.mrb[28].mxu0 %v2103_v31 }
  0xc7   : > { %1977 = vmatmul.mubr.bf16.gmra.mrb[28].mxu1 %v2103_v31 }
 0x161   : > { %v1902_v34 = vpop.f32.mrb[0].mxu0 }
 0x162   : > { %v576_v35 = vadd.f32 %v1902_v34, %v2587_v32  ;;  %v1950_v36 = vpop.f32.mrb[0].mxu1  ;;  %v567_v37 = vpop.f32.mrb[1].mxu0 }
 0x163   : > { %v1000_v38 = vadd.f32 %v1950_v36, %v2592_v33  ;;  %v568_v39 = vadd.f32 %v2587_v32, %v567_v37  ;;  %v991_v40 = vpop.f32.mrb[1].mxu1  ;;  %v1903_v41 = vpop.f32.mrb[2].mxu0 }
 0x164   : > { %v992_v42 = vadd.f32 %v2592_v33, %v991_v40  ;;  %v579_v43 = vadd.f32 %v1903_v41, %v2587_v32  ;;  %v1951_v44 = vpop.f32.mrb[2].mxu1  ;;  %v570_v45 = vpop.f32.mrb[3].mxu0  ;;  %v696_v49 = vmax.f32 %v576_v35, 0.0 }
 0x165   : > { %v1003_v46 = vadd.f32 %v1951_v44, %v2592_v33  ;;  %v571_v47 = vadd.f32 %v2587_v32, %v570_v45  ;;  %v994_v48 = vpop.f32.mrb[3].mxu1  ;;  %v694_v52 = vmax.f32 %v568_v39, 0.0 }
 0x166   : > { %v697_v50 = vmax.f32 %v579_v43, 0.0  ;;  %v995_v51 = vadd.f32 %v2592_v33, %v994_v48 }
 0x167   : > { %v1734_v53 = vpack.c.bf16 %v1003_v46, %v1000_v38  ;;  %v695_v54 = vmax.f32 %v571_v47, 0.0 }
 0x168   : > { %v1654_v55 = vpack.c.bf16 %v697_v50, %v696_v49  ;;  %v1729_v56 = vpack.c.bf16 %v995_v51, %v992_v42 }
 0x169   : > { %1821 = vst [vmem:[%s2603_s8 + $0x8] sm:$0xff] %v1734_v53   ;;  %v1649_v57 = vpack.c.bf16 %v695_v54, %v694_v52  ;;  %v1906_v58 = vpop.f32.mrb[4].mxu0 }
 0x16a   : > { %1806 = vst [vmem:[%s2607_s15 + $0x8] sm:$0xff] %v1654_v55   ;;  %1730 = vst [vmem:[%s2603_s8] sm:$0xff] %v1729_v56   ;;  %v592_v59 = vadd.f32 %v1906_v58, %v2587_v32  ;;  %v1954_v60 = vpop.f32.mrb[4].mxu1  ;;  %v583_v61 = vpop.f32.mrb[5].mxu0 }
 0x16b   : > { %1650 = vst [vmem:[%s2607_s15] sm:$0xff] %v1649_v57   ;;  %v1016_v62 = vadd.f32 %v1954_v60, %v2592_v33  ;;  %v584_v63 = vadd.f32 %v2587_v32, %v583_v61  ;;  %v1007_v0 = vpop.f32.mrb[5].mxu1  ;;  %v1907_v1 = vpop.f32.mrb[6].mxu0 }
 0x16c   : > { %v1008_v2 = vadd.f32 %v2592_v33, %v1007_v0  ;;  %v595_v3 = vadd.f32 %v1907_v1, %v2587_v32  ;;  %v1955_v4 = vpop.f32.mrb[6].mxu1  ;;  %v586_v5 = vpop.f32.mrb[7].mxu0  ;;  %v700_v9 = vmax.f32 %v592_v59, 0.0 }
 0x16d   : > { %v1019_v6 = vadd.f32 %v1955_v4, %v2592_v33  ;;  %v587_v7 = vadd.f32 %v2587_v32, %v586_v5  ;;  %v1010_v8 = vpop.f32.mrb[7].mxu1  ;;  %v698_v12 = vmax.f32 %v584_v63, 0.0 }
 0x16e   : > { %v701_v10 = vmax.f32 %v595_v3, 0.0  ;;  %v1011_v11 = vadd.f32 %v2592_v33, %v1010_v8 }
 0x16f   : > { %v1744_v13 = vpack.c.bf16 %v1019_v6, %v1016_v62  ;;  %v699_v14 = vmax.f32 %v587_v7, 0.0 }
 0x170   : > { %v1664_v15 = vpack.c.bf16 %v701_v10, %v700_v9  ;;  %v1739_v16 = vpack.c.bf16 %v1011_v11, %v1008_v2 }
 0x171   : > { %1823 = vst [vmem:[%s2603_s8 + $0x18] sm:$0xff] %v1744_v13   ;;  %v1659_v17 = vpack.c.bf16 %v699_v14, %v698_v12  ;;  %v1910_v18 = vpop.f32.mrb[8].mxu0 }
 0x172   : > { %1808 = vst [vmem:[%s2607_s15 + $0x18] sm:$0xff] %v1664_v15   ;;  %1822 = vst [vmem:[%s2603_s8 + $0x10] sm:$0xff] %v1739_v16   ;;  %v608_v19 = vadd.f32 %v1910_v18, %v2587_v32  ;;  %v1958_v20 = vpop.f32.mrb[8].mxu1  ;;  %v599_v21 = vpop.f32.mrb[9].mxu0 }
 0x173   : > { %1807 = vst [vmem:[%s2607_s15 + $0x10] sm:$0xff] %v1659_v17   ;;  %v1032_v22 = vadd.f32 %v1958_v20, %v2592_v33  ;;  %v600_v23 = vadd.f32 %v2587_v32, %v599_v21  ;;  %v1023_v24 = vpop.f32.mrb[9].mxu1  ;;  %v1911_v25 = vpop.f32.mrb[10].mxu0 }
 0x174   : > { %v1024_v26 = vadd.f32 %v2592_v33, %v1023_v24  ;;  %v611_v27 = vadd.f32 %v1911_v25, %v2587_v32  ;;  %v1959_v28 = vpop.f32.mrb[10].mxu1  ;;  %v602_v29 = vpop.f32.mrb[11].mxu0  ;;  %v704_v35 = vmax.f32 %v608_v19, 0.0 }
 0x175   : > { %v1035_v30 = vadd.f32 %v1959_v28, %v2592_v33  ;;  %v603_v31 = vadd.f32 %v2587_v32, %v602_v29  ;;  %v1026_v34 = vpop.f32.mrb[11].mxu1  ;;  %v702_v38 = vmax.f32 %v600_v23, 0.0 }
 0x176   : > { %v705_v36 = vmax.f32 %v611_v27, 0.0  ;;  %v1027_v37 = vadd.f32 %v2592_v33, %v1026_v34 }
 0x177   : > { %v1754_v39 = vpack.c.bf16 %v1035_v30, %v1032_v22  ;;  %v703_v40 = vmax.f32 %v603_v31, 0.0 }
 0x178   : > { %v1674_v41 = vpack.c.bf16 %v705_v36, %v704_v35  ;;  %v1749_v42 = vpack.c.bf16 %v1027_v37, %v1024_v26 }
 0x179   : > { %1825 = vst [vmem:[%s2603_s8 + $0x28] sm:$0xff] %v1754_v39   ;;  %v1669_v43 = vpack.c.bf16 %v703_v40, %v702_v38  ;;  %v1914_v44 = vpop.f32.mrb[12].mxu0 }
 0x17a   : > { %1810 = vst [vmem:[%s2607_s15 + $0x28] sm:$0xff] %v1674_v41   ;;  %1824 = vst [vmem:[%s2603_s8 + $0x20] sm:$0xff] %v1749_v42   ;;  %v624_v45 = vadd.f32 %v1914_v44, %v2587_v32  ;;  %v1962_v46 = vpop.f32.mrb[12].mxu1  ;;  %v615_v47 = vpop.f32.mrb[13].mxu0 }
 0x17b   : > { %1809 = vst [vmem:[%s2607_s15 + $0x20] sm:$0xff] %v1669_v43   ;;  %v1048_v48 = vadd.f32 %v1962_v46, %v2592_v33  ;;  %v616_v49 = vadd.f32 %v2587_v32, %v615_v47  ;;  %v1039_v50 = vpop.f32.mrb[13].mxu1  ;;  %v1915_v51 = vpop.f32.mrb[14].mxu0 }
 0x17c   : > { %v1040_v52 = vadd.f32 %v2592_v33, %v1039_v50  ;;  %v627_v53 = vadd.f32 %v1915_v51, %v2587_v32  ;;  %v1963_v54 = vpop.f32.mrb[14].mxu1  ;;  %v618_v55 = vpop.f32.mrb[15].mxu0  ;;  %v708_v59 = vmax.f32 %v624_v45, 0.0 }
 0x17d   : > { %v1051_v56 = vadd.f32 %v1963_v54, %v2592_v33  ;;  %v619_v57 = vadd.f32 %v2587_v32, %v618_v55  ;;  %v1042_v58 = vpop.f32.mrb[15].mxu1  ;;  %v706_v62 = vmax.f32 %v616_v49, 0.0 }
 0x17e   : > { %v709_v60 = vmax.f32 %v627_v53, 0.0  ;;  %v1043_v61 = vadd.f32 %v2592_v33, %v1042_v58 }
 0x17f   : > { %v1764_v63 = vpack.c.bf16 %v1051_v56, %v1048_v48  ;;  %v707_v0 = vmax.f32 %v619_v57, 0.0 }
 0x180   : > { %v1684_v1 = vpack.c.bf16 %v709_v60, %v708_v59  ;;  %v1759_v2 = vpack.c.bf16 %v1043_v61, %v1040_v52 }
 0x181   : > { %1827 = vst [vmem:[%s2603_s8 + $0x38] sm:$0xff] %v1764_v63   ;;  %v1679_v3 = vpack.c.bf16 %v707_v0, %v706_v62  ;;  %v1918_v4 = vpop.f32.mrb[16].mxu0 }
 0x182   : > { %1812 = vst [vmem:[%s2607_s15 + $0x38] sm:$0xff] %v1684_v1   ;;  %1826 = vst [vmem:[%s2603_s8 + $0x30] sm:$0xff] %v1759_v2   ;;  %v640_v5 = vadd.f32 %v1918_v4, %v2587_v32  ;;  %v1966_v6 = vpop.f32.mrb[16].mxu1  ;;  %v631_v7 = vpop.f32.mrb[17].mxu0 }
 0x183   : > { %1811 = vst [vmem:[%s2607_s15 + $0x30] sm:$0xff] %v1679_v3   ;;  %v1064_v8 = vadd.f32 %v1966_v6, %v2592_v33  ;;  %v632_v9 = vadd.f32 %v2587_v32, %v631_v7  ;;  %v1055_v10 = vpop.f32.mrb[17].mxu1  ;;  %v1919_v11 = vpop.f32.mrb[18].mxu0 }
 0x184   : > { %v1056_v12 = vadd.f32 %v2592_v33, %v1055_v10  ;;  %v643_v13 = vadd.f32 %v1919_v11, %v2587_v32  ;;  %v1967_v14 = vpop.f32.mrb[18].mxu1  ;;  %v634_v15 = vpop.f32.mrb[19].mxu0  ;;  %v712_v19 = vmax.f32 %v640_v5, 0.0 }
 0x185   : > { %v1067_v16 = vadd.f32 %v1967_v14, %v2592_v33  ;;  %v635_v17 = vadd.f32 %v2587_v32, %v634_v15  ;;  %v1058_v18 = vpop.f32.mrb[19].mxu1  ;;  %v710_v22 = vmax.f32 %v632_v9, 0.0 }
 0x186   : > { %v713_v20 = vmax.f32 %v643_v13, 0.0  ;;  %v1059_v21 = vadd.f32 %v2592_v33, %v1058_v18 }
 0x187   : > { %v1774_v23 = vpack.c.bf16 %v1067_v16, %v1064_v8  ;;  %v711_v24 = vmax.f32 %v635_v17, 0.0 }
 0x188   : > { %v1694_v25 = vpack.c.bf16 %v713_v20, %v712_v19  ;;  %v1769_v26 = vpack.c.bf16 %v1059_v21, %v1056_v12 }
 0x189   : > { %1829 = vst [vmem:[%s2603_s8 + $0x48] sm:$0xff] %v1774_v23   ;;  %v1689_v27 = vpack.c.bf16 %v711_v24, %v710_v22  ;;  %v1922_v28 = vpop.f32.mrb[20].mxu0 }
 0x18a   : > { %1814 = vst [vmem:[%s2607_s15 + $0x48] sm:$0xff] %v1694_v25   ;;  %1828 = vst [vmem:[%s2603_s8 + $0x40] sm:$0xff] %v1769_v26   ;;  %v656_v29 = vadd.f32 %v1922_v28, %v2587_v32  ;;  %v1970_v30 = vpop.f32.mrb[20].mxu1  ;;  %v647_v31 = vpop.f32.mrb[21].mxu0 }
 0x18b   : > { %1813 = vst [vmem:[%s2607_s15 + $0x40] sm:$0xff] %v1689_v27   ;;  %v1080_v34 = vadd.f32 %v1970_v30, %v2592_v33  ;;  %v648_v35 = vadd.f32 %v2587_v32, %v647_v31  ;;  %v1071_v36 = vpop.f32.mrb[21].mxu1  ;;  %v1923_v37 = vpop.f32.mrb[22].mxu0 }
 0x18c   : > { %v1072_v38 = vadd.f32 %v2592_v33, %v1071_v36  ;;  %v659_v39 = vadd.f32 %v1923_v37, %v2587_v32  ;;  %v1971_v40 = vpop.f32.mrb[22].mxu1  ;;  %v650_v41 = vpop.f32.mrb[23].mxu0  ;;  %v716_v45 = vmax.f32 %v656_v29, 0.0 }
 0x18d   : > { %v1083_v42 = vadd.f32 %v1971_v40, %v2592_v33  ;;  %v651_v43 = vadd.f32 %v2587_v32, %v650_v41  ;;  %v1074_v44 = vpop.f32.mrb[23].mxu1  ;;  %v714_v48 = vmax.f32 %v648_v35, 0.0 }
 0x18e   : > { %v717_v46 = vmax.f32 %v659_v39, 0.0  ;;  %v1075_v47 = vadd.f32 %v2592_v33, %v1074_v44 }
 0x18f   : > { %v1784_v49 = vpack.c.bf16 %v1083_v42, %v1080_v34  ;;  %v715_v50 = vmax.f32 %v651_v43, 0.0 }
 0x190   : > { %v1704_v51 = vpack.c.bf16 %v717_v46, %v716_v45  ;;  %v1779_v52 = vpack.c.bf16 %v1075_v47, %v1072_v38 }
 0x191   : > { %1831 = vst [vmem:[%s2603_s8 + $0x58] sm:$0xff] %v1784_v49   ;;  %v1699_v53 = vpack.c.bf16 %v715_v50, %v714_v48  ;;  %v1926_v54 = vpop.f32.mrb[24].mxu0 }
 0x192   : > { %1816 = vst [vmem:[%s2607_s15 + $0x58] sm:$0xff] %v1704_v51   ;;  %1830 = vst [vmem:[%s2603_s8 + $0x50] sm:$0xff] %v1779_v52   ;;  %v672_v55 = vadd.f32 %v1926_v54, %v2587_v32  ;;  %v1974_v56 = vpop.f32.mrb[24].mxu1  ;;  %v663_v57 = vpop.f32.mrb[25].mxu0 }
 0x193   : > { %1815 = vst [vmem:[%s2607_s15 + $0x50] sm:$0xff] %v1699_v53   ;;  %v1096_v58 = vadd.f32 %v1974_v56, %v2592_v33  ;;  %v664_v59 = vadd.f32 %v2587_v32, %v663_v57  ;;  %v1087_v60 = vpop.f32.mrb[25].mxu1  ;;  %v1927_v61 = vpop.f32.mrb[26].mxu0 }
 0x194   : > { %v1088_v62 = vadd.f32 %v2592_v33, %v1087_v60  ;;  %v675_v63 = vadd.f32 %v1927_v61, %v2587_v32  ;;  %v1975_v0 = vpop.f32.mrb[26].mxu1  ;;  %v666_v1 = vpop.f32.mrb[27].mxu0  ;;  %v720_v5 = vmax.f32 %v672_v55, 0.0 }
 0x195   : > { %v1099_v2 = vadd.f32 %v1975_v0, %v2592_v33  ;;  %v667_v3 = vadd.f32 %v2587_v32, %v666_v1  ;;  %v1090_v4 = vpop.f32.mrb[27].mxu1  ;;  %v718_v8 = vmax.f32 %v664_v59, 0.0 }
 0x196   : > { %v721_v6 = vmax.f32 %v675_v63, 0.0  ;;  %v1091_v7 = vadd.f32 %v2592_v33, %v1090_v4 }
 0x197   : > { %v1794_v9 = vpack.c.bf16 %v1099_v2, %v1096_v58  ;;  %v719_v10 = vmax.f32 %v667_v3, 0.0 }
 0x198   : > { %v1714_v11 = vpack.c.bf16 %v721_v6, %v720_v5  ;;  %v1789_v12 = vpack.c.bf16 %v1091_v7, %v1088_v62 }
 0x199   : > { %1833 = vst [vmem:[%s2603_s8 + $0x68] sm:$0xff] %v1794_v9   ;;  %v1709_v13 = vpack.c.bf16 %v719_v10, %v718_v8  ;;  %v1930_v14 = vpop.f32.mrb[28].mxu0 }
 0x19a   : > { %1818 = vst [vmem:[%s2607_s15 + $0x68] sm:$0xff] %v1714_v11   ;;  %1832 = vst [vmem:[%s2603_s8 + $0x60] sm:$0xff] %v1789_v12   ;;  %v688_v15 = vadd.f32 %v1930_v14, %v2587_v32  ;;  %v1978_v16 = vpop.f32.mrb[28].mxu1  ;;  %v679_v17 = vpop.f32.mrb[29].mxu0 }
 0x19b   : > { %1817 = vst [vmem:[%s2607_s15 + $0x60] sm:$0xff] %v1709_v13   ;;  %v1112_v18 = vadd.f32 %v1978_v16, %v2592_v33  ;;  %v680_v19 = vadd.f32 %v2587_v32, %v679_v17  ;;  %v1103_v20 = vpop.f32.mrb[29].mxu1  ;;  %v1931_v21 = vpop.f32.mrb[30].mxu0 }
 0x19c   : > { %v1104_v22 = vadd.f32 %v2592_v33, %v1103_v20  ;;  %v691_v23 = vadd.f32 %v1931_v21, %v2587_v32  ;;  %v1979_v24 = vpop.f32.mrb[30].mxu1  ;;  %v682_v25 = vpop.f32.mrb[31].mxu0  ;;  %v724_v29 = vmax.f32 %v688_v15, 0.0 }
 0x19d   : > { %v1115_v26 = vadd.f32 %v1979_v24, %v2592_v33  ;;  %v683_v27 = vadd.f32 %v2587_v32, %v682_v25  ;;  %v1106_v28 = vpop.f32.mrb[31].mxu1  ;;  %v722_v34 = vmax.f32 %v680_v19, 0.0 }
 0x19e   : > { %v725_v30 = vmax.f32 %v691_v23, 0.0  ;;  %v1107_v31 = vadd.f32 %v2592_v33, %v1106_v28 }
 0x19f   : > { %v1804_v35 = vpack.c.bf16 %v1115_v26, %v1112_v18  ;;  %v723_v36 = vmax.f32 %v683_v27, 0.0 }
 0x1a0   : > { %v1724_v37 = vpack.c.bf16 %v725_v30, %v724_v29  ;;  %v1799_v38 = vpack.c.bf16 %v1107_v31, %v1104_v22 }
 0x1a1   : > { %1835 = vst [vmem:[%s2603_s8 + $0x78] sm:$0xff] %v1804_v35   ;;  %v1719_v32 = vpack.c.bf16 %v723_v36, %v722_v34 }
 0x1a2   : > { %1820 = vst [vmem:[%s2607_s15 + $0x78] sm:$0xff] %v1724_v37   ;;  %1834 = vst [vmem:[%s2603_s8 + $0x70] sm:$0xff] %v1799_v38  }
 0x1a3   : > { %1819 = vst [vmem:[%s2607_s15 + $0x70] sm:$0xff] %v1719_v32  }
 0x1a4   : > { %2203 = shalt.err (!%p2200_p11)
}
 0x1a5   : > { %s2204_s8 = scalar_lea.hbm %s2698_s24, 2048  ;;  %s2208_s18 = scalar_lea.hbm %s2796_s6, 4096 }
 0x1a6   : > { %p2205_p0 = scmp.ne.s32.totalorder %s2698_s24, %s2204_s8  ;;  %p2209_p6 = scmp.lt.u32.totalorder %s2698_s24, %s2796_s6 }
 0x1a7   : > { %p2210_p7 = scmp.lt.u32.totalorder %s2208_s18, %s2204_s8  ;;  %p2212_p8 = scmp.lt.u32.totalorder %s2204_s8, %s2698_s24 }
 0x1a8   : > { %p2206_p4 = pnand %p2205_p0, %p2815_p12 }
 0x1a9   : > { %p2211_p2 = por %p2210_p7, %p2209_p6 }
 0x1aa   : > { %p2207_p13 = pneg %p2206_p4 }
 0x1ab   : > { %p2213_p1 = por %p2212_p8, %p2211_p2 }
 0x1ad   : > { %p2214_p10 = pnand %p2213_p1, %p2207_p13 }
 0x1af   : > { %2217 = shalt.err (!%p2214_p10)
}
 0x1b0   : > { %s2316_s7 = smov 64   ;;  %s2317_s9 = smov 4  }
 0x1b1   : > { %1991 = dma.vmem_to_hbm [thread:$0]  (%p2815_p12), %s2700_s14, 2048, %s2698_s24, %s1284_s29, %s2316_s7, %s2316_s7, %s2317_s9  }
 0x1b2   : > { %s1279_s13 = scalar_lea.sflag [#allocation4], %s2551_s28  ;;  %s2218_s11 = scalar_lea.vmem %s2708_s20, 2048 }
 0x1b3   : > { %p2219_p3 = scmp.ne.s32.totalorder %s2708_s20, %s2218_s11  ;;  %s2318_s8 = smov [#allocation8]  }
 0x1b4   : > { %s2222_s15 = sshll.u32 %s2318_s8, 4  ;;  %s2223_s15 = int_to_ptr.vmem [resolvable:$false] %s2222_s15 }
 0x1b5   : > { %p2220_p5 = pnand %p2219_p3, %p2815_p12  ;;  %s2224_s16 = scalar_lea.vmem %s2223_s15, 4096 }
 0x1b6   : > { %p2225_p11 = scmp.lt.s32.totalorder %s2708_s20, %s2223_s15  ;;  %p2226_p0 = scmp.lt.s32.totalorder %s2224_s16, %s2218_s11 }
 0x1b7   : > { %p2221_p9 = pneg %p2220_p5 }
 0x1b8   : > { %p2227_p4 = por %p2226_p0, %p2225_p11 }
 0x1ba   : > { %p2228_p13 = pnand %p2227_p4, %p2221_p9 }
 0x1bc   : > { %2231 = shalt.err (!%p2228_p13)
}
 0x1bd   : > { %s2232_s14 = scalar_lea.hbm %s2706_s19, 2048  ;;  %s2236_s18 = scalar_lea.hbm %s2795_s5, 4096 }
 0x1be   : > { %p2233_p6 = scmp.ne.s32.totalorder %s2706_s19, %s2232_s14  ;;  %p2237_p8 = scmp.lt.u32.totalorder %s2706_s19, %s2795_s5 }
 0x1bf   : > { %p2238_p1 = scmp.lt.u32.totalorder %s2236_s18, %s2232_s14  ;;  %p2240_p3 = scmp.lt.u32.totalorder %s2232_s14, %s2706_s19 }
 0x1c0   : > { %p2234_p7 = pnand %p2233_p6, %p2815_p12 }
 0x1c1   : > { %p2239_p10 = por %p2238_p1, %p2237_p8 }
 0x1c2   : > { %p2235_p2 = pneg %p2234_p7 }
 0x1c3   : > { %p2241_p5 = por %p2240_p3, %p2239_p10 }
 0x1c5   : > { %p2242_p9 = pnand %p2241_p5, %p2235_p2 }
 0x1c7   : > { %2245 = shalt.err (!%p2242_p9)
}
 0x1c8   : > { %1990 = dma.vmem_to_hbm [thread:$0]  (%p2815_p12), %s2708_s20, 2048, %s2706_s19, %s1279_s13, %s2316_s7, %s2316_s7, %s2317_s9  }
 0x1c9 PF: > { %s2816_s11 = sld [smem:[#allocation15_spill]]  ;;  %s1332_s8 = sand.u32 1, %s2288_s21  }
 0x1ca   : > { %p2818_p0 = scmp.ge.s32.totalorder %s2308_s26, 2  ;;  %s1333_s15 = scalar_lea.sflag [#allocation4], %s1332_s8 }
 0x1cf   : > { %p2817_p11 = scmp.ne.s32.totalorder %s2816_s11, 0 }
 0x1d1   : > { %p2006_p4 = pnand %p2818_p0, %p2817_p11 }
 0x1d3   : > { %2279 = dma.done.wait (!%p2006_p4), %s1333_s15, 2048  }
 0x1d4   : > { %2281 = vsyncadd (!%p2006_p4), %s1333_s15, 4294965248  ;;  %s1342_s17 = scalar_lea.sflag [#allocation10], %s1332_s8 }
 0x1d5   : > { %2283 = dma.done.wait (!%p2006_p4), %s1342_s17, 2048  }
 0x1d6   : > { %2285 = vsyncadd (!%p2006_p4), %s1342_s17, 4294965248  ;;  %s27_s26 = sadd.s32 1, %s2308_s26   ;;  %s2819_s21 = smov %s2292_s22 }
 0x1d7   : > { %p24_p13 = scmp.ge.s32.totalorder %s27_s26, 4   ;;  %s2820_s22 = smov %s2296_s23 }
 0x1d8   : > { %s2821_s23 = smov %s2502_s27  ;;  %s2822_s24 = smov %s2304_s25 }
 0x1d9   : > { %s2823_s25 = smov %s2825_s12  ;;  %26 = sbr.rel (!%p24_p13) target bundleno = 9 (0x9), region = 110 }
 0x1e0   :  { %1347 = vsyncpa [#allocation3], 1 }
 0x1e1   :  { %1349 = vsyncpa [#allocation3 + $0x1], 1 }
 0x1e2   :  { %1350 = vsyncpa [#allocation6], 1 }
 0x1e3   :  { %1351 = vsyncpa [#allocation4], 1 }
 0x1e4   :  { %1353 = vsyncpa [#allocation4 + $0x1], 1 }
 0x1e5   :  { %1354 = vsyncpa [#allocation10], 1 }
 0x1e6   :  { %1356 = vsyncpa [#allocation10 + $0x1], 1 }

</bundles_post_ra>
